<compile_context>
chip_gen: v7x
topology: tpu7x:2x2x1
jax: 0.10.0
libtpu: 0.0.40
codegen_flags: <defaults>
</compile_context>

<pallas_src>
import jax
import jax.numpy as jnp
from jax.experimental import pallas as pl
from jax.experimental.pallas import tpu as pltpu


def _round_up(n, m):
    return ((n + m - 1) // m) * m


def _cdiv(a, b):
    return -(-a // b)


def _default_vmem_limit_bytes():
    """~75% of physical VMEM: ~48 MiB on v7x (64 MiB/TC), ~96 MiB on v5e/v6e."""
    cap = None
    try:
        cap = getattr(pltpu.get_tpu_info(), "vmem_capacity_bytes", None)
    except Exception:
        cap = None
    if not cap:
        cap = 64 * 1024 * 1024  # assume the smallest generation (v7x) if unknown
    return int(min(100 * 1024 * 1024, cap * 3 // 4))


def _pick_tile_b(batch, d_in_p, h_p, bytes_x, bytes_w, vmem_limit, cap):
    """Largest 128-multiple batch tile fitting an explicit VMEM budget.

    Budget = single-buffered resident weights + double-buffered x tile
             + f32 h1/h2 intermediates (+ temp) + slack for compiler scratch.
    """
    resident = bytes_w * (d_in_p * h_p + h_p * h_p) + 4 * 3 * h_p
    slack = 4 * 1024 * 1024
    avail = max(vmem_limit - resident - slack, 1024 * 1024)
    per_row = 2 * d_in_p * bytes_x + 3 * h_p * 4 + 2 * 4
    tile = (avail // per_row) // 128 * 128
    return max(128, min(tile, cap, _round_up(batch, 128)))


def _balance_tiles(batch, tile_b):
    """Best effort: >=2 (and preferably even) tiles so v7x's second TensorCore
    gets work under dimension_semantics=('parallel',)."""
    num = _cdiv(batch, tile_b)
    if num == 1 and batch > 128:
        cand = max(128, _round_up(_cdiv(batch, 2), 128))
        if _cdiv(batch, cand) >= 2:
            return cand
    elif num > 1 and num % 2 == 1:
        cand = max(128, _round_up(_cdiv(batch, num + 1), 128))
        if _cdiv(batch, cand) % 2 == 0:
            return cand
    return tile_b


def _mlp_kernel(x_ref, w1_ref, b1_ref, w2_ref, b2_ref, w3_ref, b3_ref, o_ref):
    # Layer 1: Linear -> ReLU.  (x already in the matmul dtype; BN1 folded into
    # W2'/b2' by the wrapper; Dropout is identity in eval mode.)
    h1 = jnp.dot(x_ref[...], w1_ref[...],
                 preferred_element_type=jnp.float32) + b1_ref[...]
    h1 = jnp.maximum(h1, 0.0)

    # Layer 2: Linear(W2') -> ReLU.  (BN2 folded into the head weights/bias.)
    h2 = jnp.dot(h1.astype(w2_ref.dtype), w2_ref[...],
                 preferred_element_type=jnp.float32) + b2_ref[...]
    h2 = jnp.maximum(h2, 0.0)

    # Output head: N=1 "matmul" done as a VPU multiply + lane (XLU) reduction so
    # the MXU never sees a 1-wide column; lane-dense (1, TILE_B) store.
    head = jnp.sum(h2 * w3_ref[...], axis=-1) + b3_ref[0]        # (TILE_B,)
    o_ref[...] = head[None, :].astype(o_ref.dtype)


def mlp_classifier_forward(x, params, *, tile_b=None, matmul_dtype=jnp.float32,
                           vmem_limit_bytes=None):
    """x: (B, input_dim) float32.  Returns (B,) float32 (squeeze(1) applied).

    matmul_dtype=jnp.bfloat16 halves the streamed-x DMA and uses the bf16 MXU
    path on v6e/v7x (f32 accumulation kept); default is f32 to preserve the
    1e-4 reference tolerance.
    """
    (w1, b1, g1, be1, rm1, rv1,
     w2, b2, g2, be2, rm2, rv2,
     w3, b3) = params
    eps = 1e-5

    # --- Fold eval-mode BatchNorm1d into the *next* layer (exact algebra). ---
    s1 = g1 / jnp.sqrt(rv1 + eps)
    t1 = be1 - rm1 * s1
    s2 = g2 / jnp.sqrt(rv2 + eps)
    t2 = be2 - rm2 * s2

    w2f = s1[:, None] * w2                  # (H, H)   W2' = diag(s1) @ W2
    b2f = t1 @ w2 + b2                      # (H,)     b2' = t1 @ W2 + b2
    w3v = s2 * w3[:, 0]                     # (H,)     folded head weights (row)
    b3f = t2 @ w3[:, 0] + b3[0]             # scalar   folded head bias

    B, d_in = x.shape
    hidden = w1.shape[1]

    # 128-align contraction/feature dims once (zero padding is exact).
    d_in_p = _round_up(d_in, 128)
    h_p = _round_up(hidden, 128)

    bytes_x = jnp.dtype(matmul_dtype).itemsize
    if vmem_limit_bytes is None:
        vmem_limit_bytes = _default_vmem_limit_bytes()
    cap = 4096 if tile_b is None else max(128, _round_up(int(tile_b), 128))
    tb = _pick_tile_b(B, d_in_p, h_p, bytes_x, bytes_x, vmem_limit_bytes, cap)
    tb = _balance_tiles(B, tb)

    num_tiles = _cdiv(B, tb)
    b_pad = num_tiles * tb

    # Streamed operand: cast to the matmul dtype HERE so per-tile HBM traffic
    # is already narrow; pad batch (tail tile) and feature dim (alignment).
    xp = jnp.pad(x.astype(matmul_dtype), ((0, b_pad - B), (0, d_in_p - d_in)))

    pad_row = lambda v: jnp.pad(v, (0, h_p - hidden)).reshape(1, h_p).astype(jnp.float32)
    w1p = jnp.pad(w1, ((0, d_in_p - d_in), (0, h_p - hidden))).astype(matmul_dtype)
    w2p = jnp.pad(w2f, ((0, h_p - hidden), (0, h_p - hidden))).astype(matmul_dtype)

    # Resident operands: constant index_map + single buffer -> one DMA, half the
    # VMEM of the default double-buffered pipeline.
    resident = lambda shape: pl.BlockSpec(shape, lambda i: (0, 0),
                                          pipeline_mode=pl.Buffered(1))

    out = pl.pallas_call(
        _mlp_kernel,
        out_shape=jax.ShapeDtypeStruct((1, b_pad), jnp.float32),
        grid_spec=pltpu.PrefetchScalarGridSpec(
            num_scalar_prefetch=0,
            grid=(num_tiles,),
            in_specs=[
                # x tile (streamed, double-buffered by default).
                # TODO(synk): optionally sweep pipeline_mode=pl.Buffered(3) here
                # for very small d_in if DMA issue latency shows up in profiles.
                pl.BlockSpec((tb, d_in_p), lambda i: (i, 0)),
                resident((d_in_p, h_p)),                            # W1
                resident((1, h_p)),                                 # b1
                resident((h_p, h_p)),                               # W2' (BN1 folded)
                resident((1, h_p)),                                 # b2'
                resident((1, h_p)),                                 # w3' row (BN2 folded)
                pl.BlockSpec(memory_space=pltpu.MemorySpace.SMEM),  # b3' scalar
            ],
            out_specs=pl.BlockSpec((1, tb), lambda i: (0, i)),
        ),
        compiler_params=pltpu.CompilerParams(
            dimension_semantics=("parallel",),   # shard batch tiles over v7x's 2 TCs
            vmem_limit_bytes=int(vmem_limit_bytes),
        ),
    )(
        xp,
        w1p, pad_row(b1),
        w2p, pad_row(b2f),
        pad_row(w3v),
        b3f.reshape(1).astype(jnp.float32),
    )

    return out[0, :B]   # drop batch padding; squeeze(1) already implicit


def init_params(key, input_dim, hidden_dim):
    """Deterministic synthetic parameters (PyTorch-like uniform init)."""
    ks = jax.random.split(key, 10)

    def linear(kw, kb, fan_in, fan_out):
        bound = 1.0 / jnp.sqrt(fan_in)
        w = jax.random.uniform(kw, (fan_in, fan_out), jnp.float32, -bound, bound)
        b = jax.random.uniform(kb, (fan_out,), jnp.float32, -bound, bound)
        return w, b

    w1, b1 = linear(ks[0], ks[1], input_dim, hidden_dim)
    w2, b2 = linear(ks[2], ks[3], hidden_dim, hidden_dim)
    w3, b3 = linear(ks[4], ks[5], hidden_dim, 1)

    # BatchNorm params / running stats (non-trivial so BN actually does work).
    g1 = 1.0 + 0.1 * jax.random.normal(ks[6], (hidden_dim,), jnp.float32)
    be1 = 0.1 * jax.random.normal(ks[7], (hidden_dim,), jnp.float32)
    rm1 = 0.05 * jax.random.normal(ks[8], (hidden_dim,), jnp.float32)
    rv1 = 1.0 + 0.1 * jnp.abs(jax.random.normal(ks[9], (hidden_dim,), jnp.float32))

    g2 = jnp.ones((hidden_dim,), jnp.float32)
    be2 = jnp.zeros((hidden_dim,), jnp.float32)
    rm2 = jnp.zeros((hidden_dim,), jnp.float32)
    rv2 = jnp.ones((hidden_dim,), jnp.float32)

    return (w1, b1, g1, be1, rm1, rv1,
            w2, b2, g2, be2, rm2, rv2,
            w3, b3)


def reference_forward(x, params):
    """Pure-JAX reference implementing the same eval-mode forward (unfolded BN)."""
    (w1, b1, g1, be1, rm1, rv1,
     w2, b2, g2, be2, rm2, rv2,
     w3, b3) = params
    eps = 1e-5
    h = jnp.maximum(x @ w1 + b1, 0.0)
    h = (h - rm1) / jnp.sqrt(rv1 + eps) * g1 + be1
    h = jnp.maximum(h @ w2 + b2, 0.0)
    h = (h - rm2) / jnp.sqrt(rv2 + eps) * g2 + be2
    return (h @ w3 + b3)[:, 0]


if __name__ == "__main__":
    key = jax.random.PRNGKey(0)
    k_x, k_p = jax.random.split(key)

    batch, input_dim, hidden_dim = 8, 16, 32
    x = jax.random.normal(k_x, (batch, input_dim), jnp.float32)
    params = init_params(k_p, input_dim, hidden_dim)

    out = jax.block_until_ready(mlp_classifier_forward(x, params))
    ref = jax.block_until_ready(reference_forward(x, params))

    assert out.shape == (batch,), out.shape
    assert jnp.allclose(out, ref, atol=1e-4, rtol=1e-4), (out, ref)
    print("KERNEL_OK")
</pallas_src>

<mosaic_0001>
module attributes {stable_mosaic.version = 11 : i64} {
  func.func @_mlp_kernel(%arg0: i32, %arg1: memref<128x128xf32, #tpu.memory_space<vmem>>, %arg2: memref<128x128xf32, #tpu.memory_space<vmem>>, %arg3: memref<1x128xf32, #tpu.memory_space<vmem>>, %arg4: memref<128x128xf32, #tpu.memory_space<vmem>>, %arg5: memref<1x128xf32, #tpu.memory_space<vmem>>, %arg6: memref<1x128xf32, #tpu.memory_space<vmem>>, %arg7: memref<1xf32, #tpu.memory_space<smem>>, %arg8: memref<1x128xf32, #tpu.memory_space<vmem>>) attributes {dimension_semantics = [#tpu.dimension_semantics<parallel>], iteration_bounds = array<i64: 1>, scalar_prefetch = 0 : i64, scratch_operands = 0 : i64, tpu.core_type = #tpu.core_type<tc>, window_params = [{transform_indices = @transform_0, window_bounds = array<i64: 128, 128>}, {pipeline_mode = #tpu.pipeline_mode<synchronous>, transform_indices = @transform_1, window_bounds = array<i64: 128, 128>}, {pipeline_mode = #tpu.pipeline_mode<synchronous>, transform_indices = @transform_2, window_bounds = array<i64: 1, 128>}, {pipeline_mode = #tpu.pipeline_mode<synchronous>, transform_indices = @transform_3, window_bounds = array<i64: 128, 128>}, {pipeline_mode = #tpu.pipeline_mode<synchronous>, transform_indices = @transform_4, window_bounds = array<i64: 1, 128>}, {pipeline_mode = #tpu.pipeline_mode<synchronous>, transform_indices = @transform_5, window_bounds = array<i64: 1, 128>}, {transform_indices = @transform_6, window_bounds = array<i64: 1>}, {transform_indices = @transform_7, window_bounds = array<i64: 1, 128>}]} {
    %c0 = arith.constant 0 : index
    %c0_0 = arith.constant 0 : index
    %0 = vector.load %arg1[%c0, %c0_0] : memref<128x128xf32, #tpu.memory_space<vmem>>, vector<128x128xf32>
    %c0_1 = arith.constant 0 : index
    %c0_2 = arith.constant 0 : index
    %1 = vector.load %arg2[%c0_1, %c0_2] : memref<128x128xf32, #tpu.memory_space<vmem>>, vector<128x128xf32>
    %cst = arith.constant dense<0.000000e+00> : vector<128x128xf32>
    %2 = tpu.matmul %0, %1, %cst {dimension_numbers = #tpu.dot_dimension_numbers<[1], [0], [0], [1], [0, 0, 1, 1], [], []>} : vector<128x128xf32>, vector<128x128xf32>, vector<128x128xf32> -> vector<128x128xf32>
    %c0_3 = arith.constant 0 : index
    %c0_4 = arith.constant 0 : index
    %3 = vector.load %arg3[%c0_3, %c0_4] : memref<1x128xf32, #tpu.memory_space<vmem>>, vector<1x128xf32>
    %4 = vector.broadcast %3 : vector<1x128xf32> to vector<128x128xf32>
    %5 = arith.addf %2, %4 : vector<128x128xf32>
    %cst_5 = arith.constant 0.000000e+00 : f32
    %6 = vector.broadcast %cst_5 : f32 to vector<128x128xf32>
    %7 = arith.maximumf %5, %6 : vector<128x128xf32>
    %c0_6 = arith.constant 0 : index
    %c0_7 = arith.constant 0 : index
    %8 = vector.load %arg4[%c0_6, %c0_7] : memref<128x128xf32, #tpu.memory_space<vmem>>, vector<128x128xf32>
    %cst_8 = arith.constant dense<0.000000e+00> : vector<128x128xf32>
    %9 = tpu.matmul %7, %8, %cst_8 {dimension_numbers = #tpu.dot_dimension_numbers<[1], [0], [0], [1], [0, 0, 1, 1], [], []>} : vector<128x128xf32>, vector<128x128xf32>, vector<128x128xf32> -> vector<128x128xf32>
    %c0_9 = arith.constant 0 : index
    %c0_10 = arith.constant 0 : index
    %10 = vector.load %arg5[%c0_9, %c0_10] : memref<1x128xf32, #tpu.memory_space<vmem>>, vector<1x128xf32>
    %11 = vector.broadcast %10 : vector<1x128xf32> to vector<128x128xf32>
    %12 = arith.addf %9, %11 : vector<128x128xf32>
    %cst_11 = arith.constant 0.000000e+00 : f32
    %13 = vector.broadcast %cst_11 : f32 to vector<128x128xf32>
    %14 = arith.maximumf %12, %13 : vector<128x128xf32>
    %c0_12 = arith.constant 0 : index
    %c0_13 = arith.constant 0 : index
    %15 = vector.load %arg6[%c0_12, %c0_13] : memref<1x128xf32, #tpu.memory_space<vmem>>, vector<1x128xf32>
    %16 = vector.broadcast %15 : vector<1x128xf32> to vector<128x128xf32>
    %17 = arith.mulf %14, %16 : vector<128x128xf32>
    %cst_14 = arith.constant dense<0.000000e+00> : vector<128xf32>
    %18 = vector.multi_reduction <add>, %17, %cst_14 [1] : vector<128x128xf32> to vector<128xf32>
    %c0_15 = arith.constant 0 : index
    %19 = memref.load %arg7[%c0_15] : memref<1xf32, #tpu.memory_space<smem>>
    %20 = vector.broadcast %19 : f32 to vector<128xf32>
    %21 = arith.addf %18, %20 : vector<128xf32>
    %22 = vector.shape_cast %21 : vector<128xf32> to vector<1x128xf32>
    %c0_16 = arith.constant 0 : index
    %c0_17 = arith.constant 0 : index
    %23 = vector.load %arg8[%c0_16, %c0_17] : memref<1x128xf32, #tpu.memory_space<vmem>>, vector<1x128xf32>
    tpu.vector_store %arg8[%c0_16, %c0_17], %22 {strides = array<i32>} : memref<1x128xf32, #tpu.memory_space<vmem>>, vector<1x128xf32>,
    return
  }
  func.func @transform_0(%arg0: i32) -> (i32, i32) {
    %c0_i32 = arith.constant 0 : i32
    %c0_i32_0 = arith.constant 0 : i32
    return %arg0, %c0_i32 : i32, i32
  }
  func.func @transform_1(%arg0: i32) -> (i32, i32) {
    %c0_i32 = arith.constant 0 : i32
    %c0_i32_0 = arith.constant 0 : i32
    %c0_i32_1 = arith.constant 0 : i32
    return %c0_i32, %c0_i32_0 : i32, i32
  }
  func.func @transform_2(%arg0: i32) -> (i32, i32) {
    %c0_i32 = arith.constant 0 : i32
    %c0_i32_0 = arith.constant 0 : i32
    %c0_i32_1 = arith.constant 0 : i32
    return %c0_i32, %c0_i32_0 : i32, i32
  }
  func.func @transform_3(%arg0: i32) -> (i32, i32) {
    %c0_i32 = arith.constant 0 : i32
    %c0_i32_0 = arith.constant 0 : i32
    %c0_i32_1 = arith.constant 0 : i32
    return %c0_i32, %c0_i32_0 : i32, i32
  }
  func.func @transform_4(%arg0: i32) -> (i32, i32) {
    %c0_i32 = arith.constant 0 : i32
    %c0_i32_0 = arith.constant 0 : i32
    %c0_i32_1 = arith.constant 0 : i32
    return %c0_i32, %c0_i32_0 : i32, i32
  }
  func.func @transform_5(%arg0: i32) -> (i32, i32) {
    %c0_i32 = arith.constant 0 : i32
    %c0_i32_0 = arith.constant 0 : i32
    %c0_i32_1 = arith.constant 0 : i32
    return %c0_i32, %c0_i32_0 : i32, i32
  }
  func.func @transform_6(%arg0: i32) -> i32 {
    %c0_i32 = arith.constant 0 : i32
    %c0_i32_0 = arith.constant 0 : i32
    return %c0_i32 : i32
  }
  func.func @transform_7(%arg0: i32) -> (i32, i32) {
    %c0_i32 = arith.constant 0 : i32
    %c0_i32_0 = arith.constant 0 : i32
    return %c0_i32, %arg0 : i32, i32
  }
}

</mosaic_0001>

<bundles_post_ra>
// kernel: tpu_custom_call.1
= control target key start
LH: loop header
LB: loop body
LE: loop exit
PB: predicated region body
PF: predicated region fallthrough
CT: control target
= control target key end

     0   :  { %13 = vsyncpa [#allocation4], 0  ;;  %s1227_s0 = inlined_call_operand.hbm [shape: f32[128,128], index: 0, kind: input, shape index: {}]   ;;  %s1228_s1 = inlined_call_operand.hbm [shape: f32[128,128], index: 1, kind: input, shape index: {}]   ;;  %s1229_s2 = inlined_call_operand.vmem [shape: f32[1,128], index: 2, kind: input, shape index: {}]   ;;  %s1230_s3 = inlined_call_operand.hbm [shape: f32[128,128], index: 3, kind: input, shape index: {}]   ;;  %s1231_s4 = inlined_call_operand.vmem [shape: f32[1,128], index: 4, kind: input, shape index: {}]   ;;  %s1232_s5 = inlined_call_operand.vmem [shape: f32[1,128], index: 5, kind: input, shape index: {}]   ;;  %s1233_s6 = inlined_call_operand.<no memory space> [shape: f32[1], index: 6, kind: input, shape index: {}]   ;;  %s1234_s7 = inlined_call_operand.hbm [shape: f32[1,128], index: 7, kind: output, shape index: {}]  }
   0x1   :  { %14 = vsyncpa [#allocation7], 0 }
   0x2   :  { %15 = vsyncpa [#allocation5], 0  ;;  %s1014_s24 = smov [#allocation6]   ;;  %s1015_s26 = smov [#allocation3]  }
   0x3   :  { %s33_s25 = sshll.u32 %s1014_s24, 4  ;;  %s21_s27 = sshll.u32 %s1015_s26, 4  ;;  %s34_s25 = int_to_ptr.vmem [resolvable:$true] %s33_s25  ;;  %s1060_s27 = int_to_ptr.vmem [resolvable:$true] %s21_s27 }
   0x4   :  { %s920_s30 = scalar_lea.hbm %s1228_s1, 2048 }
   0x5   :  { %p921_p0 = scmp.ne.s32.totalorder %s1228_s1, %s920_s30  ;;  %p924_p1 = scmp.lt.u32.totalorder %s920_s30, %s1228_s1 }
   0x7   :  { %p926_p2 = pnand %p924_p1, %p921_p0 }
   0x9   :  { %929 = shalt.err (!%p926_p2)
}
   0xa   :  { %s930_s12 = scalar_lea.vmem %s34_s25, 2048  ;;  %p935_p4 = scmp.lt.s32.totalorder %s34_s25, %s34_s25 }
   0xb   :  { %p931_p3 = scmp.ne.s32.totalorder %s34_s25, %s930_s12  ;;  %p936_p5 = scmp.lt.s32.totalorder %s930_s12, %s930_s12 }
   0xd   :  { %p937_p6 = por %p936_p5, %p935_p4 }
   0xf   :  { %p938_p7 = pnand %p937_p6, %p931_p3 }
  0x11   :  { %941 = shalt.err (!%p938_p7)
}
  0x12   :  { %s1016_s13 = smov 128   ;;  %s1017_s14 = smov 8  }
  0x13   :  { %39 = dma.hbm_to_vmem [thread:$0]  %s1228_s1, 2048, %s34_s25, [#allocation7], %s1016_s13, %s1016_s13, %s1017_s14  }
  0x14   :  { %s942_s19 = scalar_lea.hbm %s1227_s0, 2048 }
  0x15   :  { %p943_p8 = scmp.ne.s32.totalorder %s1227_s0, %s942_s19  ;;  %p946_p9 = scmp.lt.u32.totalorder %s942_s19, %s1227_s0 }
  0x17   :  { %p948_p10 = pnand %p946_p9, %p943_p8 }
  0x19   :  { %951 = shalt.err (!%p948_p10)
}
  0x1a   :  { %s952_s24 = scalar_lea.vmem %s1060_s27, 2048  ;;  %p957_p12 = scmp.lt.s32.totalorder %s1060_s27, %s1060_s27 }
  0x1b   :  { %p953_p11 = scmp.ne.s32.totalorder %s1060_s27, %s952_s24  ;;  %p958_p13 = scmp.lt.s32.totalorder %s952_s24, %s952_s24 }
  0x1d   :  { %p959_p0 = por %p958_p13, %p957_p12 }
  0x1f   :  { %p960_p1 = pnand %p959_p0, %p953_p11 }
  0x21   :  { %963 = shalt.err (!%p960_p1)
}
  0x22   :  { %27 = dma.hbm_to_vmem [thread:$0]  %s1227_s0, 2048, %s1060_s27, [#allocation4], %s1016_s13, %s1016_s13, %s1017_s14  }
  0x23   :  { %s1018_s26 = smov [#allocation8]   ;;  %s964_s8 = scalar_lea.hbm %s1230_s3, 2048 }
  0x24   :  { %s47_s28 = sshll.u32 %s1018_s26, 4  ;;  %p965_p2 = scmp.ne.s32.totalorder %s1230_s3, %s964_s8  ;;  %s48_s28 = int_to_ptr.vmem [resolvable:$true] %s47_s28 }
  0x25   :  { %p968_p3 = scmp.lt.u32.totalorder %s964_s8, %s1230_s3 }
  0x27   :  { %p970_p4 = pnand %p968_p3, %p965_p2 }
  0x29   :  { %973 = shalt.err (!%p970_p4)
}
  0x2a   :  { %s974_s15 = scalar_lea.vmem %s48_s28, 2048  ;;  %p979_p6 = scmp.lt.s32.totalorder %s48_s28, %s48_s28 }
  0x2b   :  { %p975_p5 = scmp.ne.s32.totalorder %s48_s28, %s974_s15  ;;  %p980_p7 = scmp.lt.s32.totalorder %s974_s15, %s974_s15 }
  0x2d   :  { %p981_p8 = por %p980_p7, %p979_p6 }
  0x2f   :  { %p982_p9 = pnand %p981_p8, %p975_p5 }
  0x31   :  { %985 = shalt.err (!%p982_p9)
}
  0x32   :  { %53 = dma.hbm_to_vmem [thread:$0]  %s1230_s3, 2048, %s48_s28, [#allocation7], %s1016_s13, %s1016_s13, %s1017_s14  }
  0x33   :  { %1008 = dma.done.wait [#allocation4], 2048  }
  0x34   :  { %1009 = vsyncadd [#allocation4], 4294965248 }
  0x35   :  { %1010 = dma.done.wait [#allocation7], 4096  }
  0x36   :  { %1011 = vsyncadd [#allocation7], 4294963200  ;;  %v85_v0 = vld [vmem:[#allocation6] sm:$0xff]  ;;  %v86_v1 = vld [vmem:[#allocation6 + $0x8] sm:$0xff]  ;;  %vm553_vm0 = vcmask 130112   ;;  %vm560_vm1 = vcmask 195712  }
  0x37   :  { %v87_v2 = vld [vmem:[#allocation6 + $0x10] sm:$0xff]  ;;  %v850_v3 = vpack.c.bf16 %v86_v1, %v85_v0  ;;  %v88_v4 = vld [vmem:[#allocation6 + $0x18] sm:$0xff]  ;;  %v89_v6 = vld [vmem:[#allocation6 + $0x20] sm:$0xff]  ;;  %vm567_vm2 = vcmask 261312   ;;  %vm574_vm3 = vcmask 326912   ;;  %vm581_vm4 = vcmask 392512  }
  0x38   :  { %v854_v5 = vpack.c.bf16 %v88_v4, %v87_v2  ;;  %v90_v7 = vld [vmem:[#allocation6 + $0x28] sm:$0xff]  ;;  %v69_v9 = vld [vmem:[#allocation3] sm:$0xff]  ;;  %v91_v10 = vld [vmem:[#allocation6 + $0x30] sm:$0xff]  ;;  %vm588_vm5 = vcmask 458112   ;;  %vm595_vm6 = vcmask 523712   ;;  %vm602_vm7 = vcmask 589312  }
  0x39   :  { %851 = vmatprep.subr.bf16.mxu0 %v850_v3  ;;  %v858_v8 = vpack.c.bf16 %v90_v7, %v89_v6  ;;  %v92_v11 = vld [vmem:[#allocation6 + $0x38] sm:$0xff]  ;;  %770 = vmatprep.mubr.f32.mxu0 %v69_v9  ;;  %v93_v13 = vld [vmem:[#allocation6 + $0x40] sm:$0xff]  ;;  %v94_v14 = vld [vmem:[#allocation6 + $0x48] sm:$0xff]  ;;  %vm609_vm8 = vcmask 654912   ;;  %vm616_vm9 = vcmask 720512   ;;  %vm623_vm10 = vcmask 786112  }
  0x3a   :  { %853 = vmatpush3.bf16.msra.mxu0 %v850_v3  ;;  %v862_v12 = vpack.c.bf16 %v92_v11, %v91_v10  ;;  %v269_v15 = vld [vmem:[#allocation8] sm:$0xff]  ;;  %v270_v16 = vld [vmem:[#allocation8 + $0x8] sm:$0xff]  ;;  %v271_v17 = vld [vmem:[#allocation8 + $0x10] sm:$0xff]  ;;  %v866_v21 = vpack.c.bf16 %v94_v14, %v93_v13  ;;  %vm630_vm11 = vcmask 851712   ;;  %vm637_vm12 = vcmask 917312  }
  0x3b   :  { %855 = vmatprep.subr.bf16.mxu0 %v854_v5  ;;  %v272_v18 = vld [vmem:[#allocation8 + $0x18] sm:$0xff]  ;;  %v882_v19 = vpack.c.bf16 %v270_v16, %v269_v15  ;;  %v273_v22 = vld [vmem:[#allocation8 + $0x20] sm:$0xff]  ;;  %v274_v23 = vld [vmem:[#allocation8 + $0x28] sm:$0xff]  ;;  %vm644_vm13 = vcmask 982912   ;;  %vm651_vm14 = vcmask 1048512  }
  0x3c   :  { %v886_v20 = vpack.c.bf16 %v272_v18, %v271_v17  ;;  %v95_v24 = vld [vmem:[#allocation6 + $0x50] sm:$0xff]  ;;  %v96_v25 = vld [vmem:[#allocation6 + $0x58] sm:$0xff]  ;;  %v890_v26 = vpack.c.bf16 %v274_v23, %v273_v22  ;;  %v97_v30 = vld [vmem:[#allocation6 + $0x60] sm:$0xff] }
  0x3d   :  { %883 = vmatprep.subr.bf16.mxu1 %v882_v19  ;;  %v870_v27 = vpack.c.bf16 %v96_v25, %v95_v24  ;;  %v275_v28 = vld [vmem:[#allocation8 + $0x30] sm:$0xff]  ;;  %v276_v29 = vld [vmem:[#allocation8 + $0x38] sm:$0xff]  ;;  %v98_v31 = vld [vmem:[#allocation6 + $0x68] sm:$0xff] }
  0x3e   :  { %857 = vmatpush3.bf16.msra.mxu0 %v854_v5  ;;  %885 = vmatpush3.bf16.msra.mxu1 %v882_v19  ;;  %v894_v32 = vpack.c.bf16 %v276_v29, %v275_v28  ;;  %v874_v33 = vpack.c.bf16 %v98_v31, %v97_v30  ;;  %v277_v34 = vld [vmem:[#allocation8 + $0x40] sm:$0xff]  ;;  %v278_v35 = vld [vmem:[#allocation8 + $0x48] sm:$0xff]  ;;  %v99_v36 = vld [vmem:[#allocation6 + $0x70] sm:$0xff] }
  0x3f   :  { %859 = vmatprep.subr.bf16.mxu0 %v858_v8  ;;  %887 = vmatprep.subr.bf16.mxu1 %v886_v20  ;;  %v100_v37 = vld [vmem:[#allocation6 + $0x78] sm:$0xff]  ;;  %v898_v38 = vpack.c.bf16 %v278_v35, %v277_v34  ;;  %v279_v40 = vld [vmem:[#allocation8 + $0x50] sm:$0xff]  ;;  %v281_v43 = vld [vmem:[#allocation8 + $0x60] sm:$0xff] }
  0x40   :  { %v878_v39 = vpack.c.bf16 %v100_v37, %v99_v36  ;;  %v280_v41 = vld [vmem:[#allocation8 + $0x58] sm:$0xff]  ;;  %v282_v44 = vld [vmem:[#allocation8 + $0x68] sm:$0xff]  ;;  %v71_v47 = vld [vmem:[#allocation3 + $0x10] sm:$0xff] }
  0x41   :  { %v902_v42 = vpack.c.bf16 %v280_v41, %v279_v40  ;;  %v70_v45 = vld [vmem:[#allocation3 + $0x8] sm:$0xff]  ;;  %v906_v46 = vpack.c.bf16 %v282_v44, %v281_v43  ;;  %v72_v48 = vld [vmem:[#allocation3 + $0x18] sm:$0xff]  ;;  %v73_v49 = vld [vmem:[#allocation3 + $0x20] sm:$0xff] }
  0x42   :  { %861 = vmatpush3.bf16.msra.mxu0 %v858_v8  ;;  %889 = vmatpush3.bf16.msra.mxu1 %v886_v20  ;;  %v74_v50 = vld [vmem:[#allocation3 + $0x28] sm:$0xff]  ;;  %v75_v51 = vld [vmem:[#allocation3 + $0x30] sm:$0xff]  ;;  %v76_v52 = vld [vmem:[#allocation3 + $0x38] sm:$0xff] }
  0x43   :  { %863 = vmatprep.subr.bf16.mxu0 %v862_v12  ;;  %891 = vmatprep.subr.bf16.mxu1 %v890_v26  ;;  %v77_v53 = vld [vmem:[#allocation3 + $0x40] sm:$0xff]  ;;  %v78_v54 = vld [vmem:[#allocation3 + $0x48] sm:$0xff]  ;;  %v79_v55 = vld [vmem:[#allocation3 + $0x50] sm:$0xff] }
  0x44   :  { %v80_v56 = vld [vmem:[#allocation3 + $0x58] sm:$0xff]  ;;  %v81_v57 = vld [vmem:[#allocation3 + $0x60] sm:$0xff]  ;;  %v82_v58 = vld [vmem:[#allocation3 + $0x68] sm:$0xff] }
  0x45   :  { %v83_v59 = vld [vmem:[#allocation3 + $0x70] sm:$0xff]  ;;  %v84_v60 = vld [vmem:[#allocation3 + $0x78] sm:$0xff]  ;;  %v671_v0 = vld [vmem:[%s1229_s2] ss:$0 sm:$0xff] }
  0x46   :  { %865 = vmatpush3.bf16.msra.mxu0 %v862_v12  ;;  %893 = vmatpush3.bf16.msra.mxu1 %v890_v26  ;;  %v283_v61 = vld [vmem:[#allocation8 + $0x70] sm:$0xff]  ;;  %v284_v62 = vld [vmem:[#allocation8 + $0x78] sm:$0xff] }
  0x47   :  { %867 = vmatprep.subr.bf16.mxu0 %v866_v21  ;;  %895 = vmatprep.subr.bf16.mxu1 %v894_v32  ;;  %v910_v63 = vpack.c.bf16 %v284_v62, %v283_v61 }
  0x4a   :  { %869 = vmatpush3.bf16.msra.mxu0 %v866_v21  ;;  %897 = vmatpush3.bf16.msra.mxu1 %v894_v32 }
  0x4b   :  { %871 = vmatprep.subr.bf16.mxu0 %v870_v27  ;;  %899 = vmatprep.subr.bf16.mxu1 %v898_v38 }
  0x4e   :  { %873 = vmatpush3.bf16.msra.mxu0 %v870_v27  ;;  %901 = vmatpush3.bf16.msra.mxu1 %v898_v38 }
  0x4f   :  { %875 = vmatprep.subr.bf16.mxu0 %v874_v33  ;;  %903 = vmatprep.subr.bf16.mxu1 %v902_v42 }
  0x52   :  { %877 = vmatpush3.bf16.msra.mxu0 %v874_v33  ;;  %905 = vmatpush3.bf16.msra.mxu1 %v902_v42 }
  0x53   :  { %879 = vmatprep.subr.bf16.mxu0 %v878_v39  ;;  %907 = vmatprep.subr.bf16.mxu1 %v906_v46 }
  0x56   :  { %881 = vmatpush3.bf16.msra.mxu0 %v878_v39  ;;  %909 = vmatpush3.bf16.msra.mxu1 %v906_v46 }
  0x57   :  { %911 = vmatprep.subr.bf16.mxu1 %v910_v63 }
  0x59   :  { %771 = vmatmul.mubr.f32.vlgmr.msra.gmra.mrb[0].mxu0 %v70_v45 }
  0x5a   :  { %773 = vmatprep.mubr.f32.mxu0 %v71_v47  ;;  %913 = vmatpush3.bf16.msra.mxu1 %v910_v63 }
  0x5d   :  { %774 = vmatmul.mubr.f32.gmra.mrb[2].mxu0 %v72_v48 }
  0x5e   :  { %776 = vmatprep.mubr.f32.mxu0 %v73_v49  ;;  %v1118_v49 = vld [vmem:[%s1231_s4] ss:$0 sm:$0xff] }
  0x61   :  { %777 = vmatmul.mubr.f32.gmra.mrb[4].mxu0 %v74_v50 }
  0x62   :  { %779 = vmatprep.mubr.f32.mxu0 %v75_v51 }
  0x65   :  { %780 = vmatmul.mubr.f32.gmra.mrb[6].mxu0 %v76_v52 }
  0x66   :  { %782 = vmatprep.mubr.f32.mxu0 %v77_v53 }
  0x69   :  { %783 = vmatmul.mubr.f32.gmra.mrb[8].mxu0 %v78_v54  ;;  %v1125_v54 = vld [vmem:[%s1232_s5] ss:$0 sm:$0xff] }
  0x6a   :  { %785 = vmatprep.mubr.f32.mxu0 %v79_v55 }
  0x6d   :  { %786 = vmatmul.mubr.f32.gmra.mrb[10].mxu0 %v80_v56 }
  0x6e   :  { %788 = vmatprep.mubr.f32.mxu0 %v81_v57 }
  0x71   :  { %789 = vmatmul.mubr.f32.gmra.mrb[12].mxu0 %v82_v58 }
  0x72   :  { %791 = vmatprep.mubr.f32.mxu0 %v83_v59 }
  0x75   :  { %792 = vmatmul.mubr.f32.gmra.mrb[14].mxu0 %v84_v60 }
 0x12c   :  { %v772_v1 = vpop.f32.mrb[0].mxu0 }
 0x12d   :  { %v180_v2 = vadd.f32 %v772_v1, %v671_v0  ;;  %v174_v3 = vpop.f32.mrb[1].mxu0 }
 0x12e   :  { %v175_v4 = vadd.f32 %v671_v0, %v174_v3 }
 0x12f   :  { %v254_v7 = vmax.f32 %v180_v2, 0.0 }
 0x130   :  { %v775_v5 = vpop.f32.mrb[2].mxu0  ;;  %v253_v6 = vmax.f32 %v175_v4, 0.0 }
 0x131   :  { %v190_v8 = vadd.f32 %v775_v5, %v671_v0  ;;  %v184_v9 = vpop.f32.mrb[3].mxu0 }
 0x132   :  { %v185_v10 = vadd.f32 %v671_v0, %v184_v9  ;;  %826 = vmatprep.mubr.f32.mxu1 %v253_v6 }
 0x133   :  { %827 = vmatmul.mubr.f32.vlgmr.msra.gmra.mrb[0].mxu1 %v254_v7  ;;  %v256_v13 = vmax.f32 %v190_v8, 0.0 }
 0x134   :  { %v255_v11 = vmax.f32 %v185_v10, 0.0  ;;  %v778_v12 = vpop.f32.mrb[4].mxu0 }
 0x135   :  { %v200_v14 = vadd.f32 %v778_v12, %v671_v0  ;;  %v194_v15 = vpop.f32.mrb[5].mxu0 }
 0x136   :  { %v195_v16 = vadd.f32 %v671_v0, %v194_v15  ;;  %829 = vmatprep.mubr.f32.mxu1 %v255_v11 }
 0x137   :  { %v258_v17 = vmax.f32 %v200_v14, 0.0  ;;  %830 = vmatmul.mubr.f32.gmra.mrb[2].mxu1 %v256_v13 }
 0x138   :  { %v257_v18 = vmax.f32 %v195_v16, 0.0  ;;  %v781_v19 = vpop.f32.mrb[6].mxu0 }
 0x139   :  { %v210_v20 = vadd.f32 %v781_v19, %v671_v0  ;;  %v204_v21 = vpop.f32.mrb[7].mxu0 }
 0x13a   :  { %v205_v22 = vadd.f32 %v671_v0, %v204_v21  ;;  %832 = vmatprep.mubr.f32.mxu1 %v257_v18 }
 0x13b   :  { %v260_v23 = vmax.f32 %v210_v20, 0.0  ;;  %833 = vmatmul.mubr.f32.gmra.mrb[4].mxu1 %v258_v17 }
 0x13c   :  { %v259_v24 = vmax.f32 %v205_v22, 0.0  ;;  %v784_v25 = vpop.f32.mrb[8].mxu0 }
 0x13d   :  { %v220_v26 = vadd.f32 %v784_v25, %v671_v0  ;;  %v214_v27 = vpop.f32.mrb[9].mxu0 }
 0x13e   :  { %v215_v28 = vadd.f32 %v671_v0, %v214_v27  ;;  %835 = vmatprep.mubr.f32.mxu1 %v259_v24 }
 0x13f   :  { %v262_v29 = vmax.f32 %v220_v26, 0.0  ;;  %836 = vmatmul.mubr.f32.gmra.mrb[6].mxu1 %v260_v23 }
 0x140   :  { %v261_v30 = vmax.f32 %v215_v28, 0.0  ;;  %v787_v31 = vpop.f32.mrb[10].mxu0 }
 0x141   :  { %v230_v32 = vadd.f32 %v787_v31, %v671_v0  ;;  %v224_v33 = vpop.f32.mrb[11].mxu0 }
 0x142   :  { %v225_v34 = vadd.f32 %v671_v0, %v224_v33  ;;  %838 = vmatprep.mubr.f32.mxu1 %v261_v30 }
 0x143   :  { %v264_v35 = vmax.f32 %v230_v32, 0.0  ;;  %839 = vmatmul.mubr.f32.gmra.mrb[8].mxu1 %v262_v29 }
 0x144   :  { %v263_v36 = vmax.f32 %v225_v34, 0.0  ;;  %v790_v37 = vpop.f32.mrb[12].mxu0 }
 0x145   :  { %v240_v38 = vadd.f32 %v790_v37, %v671_v0  ;;  %v234_v39 = vpop.f32.mrb[13].mxu0 }
 0x146   :  { %v235_v40 = vadd.f32 %v671_v0, %v234_v39  ;;  %841 = vmatprep.mubr.f32.mxu1 %v263_v36 }
 0x147   :  { %v266_v41 = vmax.f32 %v240_v38, 0.0  ;;  %842 = vmatmul.mubr.f32.gmra.mrb[10].mxu1 %v264_v35 }
 0x148   :  { %v265_v42 = vmax.f32 %v235_v40, 0.0  ;;  %v793_v43 = vpop.f32.mrb[14].mxu0 }
 0x149   :  { %v250_v44 = vadd.f32 %v793_v43, %v671_v0  ;;  %v244_v45 = vpop.f32.mrb[15].mxu0 }
 0x14a   :  { %v245_v46 = vadd.f32 %v671_v0, %v244_v45  ;;  %844 = vmatprep.mubr.f32.mxu1 %v265_v42 }
 0x14b   :  { %v268_v47 = vmax.f32 %v250_v44, 0.0  ;;  %845 = vmatmul.mubr.f32.gmra.mrb[12].mxu1 %v266_v41 }
 0x14c   :  { %v267_v48 = vmax.f32 %v245_v46, 0.0 }
 0x14e   :  { %847 = vmatprep.mubr.f32.mxu1 %v267_v48 }
 0x14f   :  { %848 = vmatmul.mubr.f32.gmra.mrb[14].mxu1 %v268_v47 }
 0x206   :  { %v828_v50 = vpop.f32.mrb[0].mxu1 }
 0x207   :  { %v364_v51 = vadd.f32 %v828_v50, %v1118_v49  ;;  %v358_v52 = vpop.f32.mrb[1].mxu1 }
 0x208   :  { %v359_v53 = vadd.f32 %v1118_v49, %v358_v52  ;;  %v542_v52 = vlaneseq }
 0x209   :  { %v438_v55 = vmax.f32 %v364_v51, 0.0 }
 0x20a   :  { %v831_v56 = vpop.f32.mrb[2].mxu1  ;;  %v437_v57 = vmax.f32 %v359_v53, 0.0  ;;  %v1157_v53 = vand.u32 127, %v542_v52 }
 0x20b   :  { %v374_v58 = vadd.f32 %v831_v56, %v1118_v49  ;;  %v368_v59 = vpop.f32.mrb[3].mxu1  ;;  %v461_v60 = vmul.f32 %v1125_v54, %v438_v55 }
 0x20c   :  { %v369_v61 = vadd.f32 %v1118_v49, %v368_v59  ;;  %v460_v4 = vmul.f32 %v1125_v54, %v437_v57  ;;  %v548_v56 = vadd.s32 4294967288, %v1157_v53  ;;  %v1165_v57 = vstv %s1233_s6  ;;  %s1019_s6 = smov [#allocation9]  }
 0x20d   :  { %v440_v62 = vmax.f32 %v374_v58, 0.0  ;;  %478 = vadd.xlane.f32.xlu0 %v461_v60  ;;  %v555_v58 = vadd.s32 4294967280, %v1157_v53  ;;  %v562_v59 = vadd.s32 4294967272, %v1157_v53  ;;  %s661_s18 = sshll.u32 %s1019_s6, 4  ;;  %s662_s18 = int_to_ptr.vmem [resolvable:$true] %s661_s18 }
 0x20e   :  { %v834_v63 = vpop.f32.mrb[4].mxu1  ;;  %v439_v0 = vmax.f32 %v369_v61, 0.0  ;;  %s986_s19 = scalar_lea.vmem %s662_s18, 16  ;;  %s990_s20 = scalar_lea.vmem %s662_s18, 32 }
 0x20f   :  { %v384_v1 = vadd.f32 %v834_v63, %v1118_v49  ;;  %v378_v2 = vpop.f32.mrb[5].mxu1  ;;  %v463_v3 = vmul.f32 %v1125_v54, %v440_v62  ;;  %v569_v62 = vadd.s32 4294967264, %v1157_v53  ;;  %p987_p10 = scmp.ne.s32.totalorder %s662_s18, %s986_s19  ;;  %p991_p11 = scmp.lt.s32.totalorder %s662_s18, %s662_s18 }
 0x210   :  { %v379_v5 = vadd.f32 %v1118_v49, %v378_v2  ;;  %v462_v11 = vmul.f32 %v1125_v54, %v439_v0  ;;  %v576_v2 = vadd.s32 4294967256, %v1157_v53  ;;  %p992_p12 = scmp.lt.s32.totalorder %s990_s20, %s986_s19 }
 0x211   :  { %482 = vadd.xlane.f32.xlu1 %v463_v3  ;;  %476 = vadd.xlane.f32.xlu0 %v460_v4  ;;  %v442_v8 = vmax.f32 %v384_v1, 0.0  ;;  %v583_v4 = vadd.s32 4294967248, %v1157_v53 }
 0x212   :  { %v441_v6 = vmax.f32 %v379_v5, 0.0  ;;  %v837_v7 = vpop.f32.mrb[6].mxu1  ;;  %p993_p13 = por %p992_p12, %p991_p11 }
 0x213   :  { %v394_v9 = vadd.f32 %v837_v7, %v1118_v49  ;;  %v388_v10 = vpop.f32.mrb[7].mxu1  ;;  %v465_v19 = vmul.f32 %v1125_v54, %v442_v8 }
 0x214   :  { %v389_v12 = vadd.f32 %v1118_v49, %v388_v10  ;;  %v464_v13 = vmul.f32 %v1125_v54, %v441_v6  ;;  %p994_p0 = pnand %p993_p13, %p987_p10 }
 0x215   :  { %480 = vadd.xlane.f32.xlu1 %v462_v11  ;;  %v444_v16 = vmax.f32 %v394_v9, 0.0 }
 0x216   :  { %v443_v14 = vmax.f32 %v389_v12, 0.0  ;;  %v840_v15 = vpop.f32.mrb[8].mxu1  ;;  %484 = vadd.xlane.f32.xlu0 %v464_v13 }
 0x217   :  { %v404_v17 = vadd.f32 %v840_v15, %v1118_v49  ;;  %v398_v18 = vpop.f32.mrb[9].mxu1  ;;  %v467_v27 = vmul.f32 %v1125_v54, %v444_v16 }
 0x218   :  { %v399_v20 = vadd.f32 %v1118_v49, %v398_v18  ;;  %v466_v21 = vmul.f32 %v1125_v54, %v443_v14 }
 0x219   :  { %486 = vadd.xlane.f32.xlu1 %v465_v19  ;;  %v446_v24 = vmax.f32 %v404_v17, 0.0  ;;  %v590_v17 = vadd.s32 4294967240, %v1157_v53 }
 0x21a   :  { %v445_v22 = vmax.f32 %v399_v20, 0.0  ;;  %v843_v23 = vpop.f32.mrb[10].mxu1  ;;  %488 = vadd.xlane.f32.xlu0 %v466_v21 }
 0x21b   :  { %v414_v25 = vadd.f32 %v843_v23, %v1118_v49  ;;  %v408_v26 = vpop.f32.mrb[11].mxu1  ;;  %v469_v35 = vmul.f32 %v1125_v54, %v446_v24 }
 0x21c   :  { %v409_v28 = vadd.f32 %v1118_v49, %v408_v26  ;;  %v468_v29 = vmul.f32 %v1125_v54, %v445_v22  ;;  %v597_v22 = vadd.s32 4294967232, %v1157_v53 }
 0x21d   :  { %490 = vadd.xlane.f32.xlu1 %v467_v27  ;;  %v448_v32 = vmax.f32 %v414_v25, 0.0 }
 0x21e   :  { %v447_v30 = vmax.f32 %v409_v28, 0.0  ;;  %v846_v31 = vpop.f32.mrb[12].mxu1  ;;  %492 = vadd.xlane.f32.xlu0 %v468_v29 }
 0x21f   :  { %v424_v33 = vadd.f32 %v846_v31, %v1118_v49  ;;  %v418_v34 = vpop.f32.mrb[13].mxu1  ;;  %v471_v43 = vmul.f32 %v1125_v54, %v448_v32  ;;  %v604_v31 = vadd.s32 4294967224, %v1157_v53 }
 0x220   :  { %v419_v36 = vadd.f32 %v1118_v49, %v418_v34  ;;  %v470_v37 = vmul.f32 %v1125_v54, %v447_v30 }
 0x221   :  { %494 = vadd.xlane.f32.xlu1 %v469_v35  ;;  %v450_v40 = vmax.f32 %v424_v33, 0.0  ;;  %v611_v35 = vadd.s32 4294967216, %v1157_v53 }
 0x222   :  { %v449_v38 = vmax.f32 %v419_v36, 0.0  ;;  %v849_v39 = vpop.f32.mrb[14].mxu1  ;;  %496 = vadd.xlane.f32.xlu0 %v470_v37 }
 0x223   :  { %v434_v41 = vadd.f32 %v849_v39, %v1118_v49  ;;  %v428_v42 = vpop.f32.mrb[15].mxu1  ;;  %v473_v48 = vmul.f32 %v1125_v54, %v450_v40 }
 0x224   :  { %v429_v44 = vadd.f32 %v1118_v49, %v428_v42  ;;  %v472_v45 = vmul.f32 %v1125_v54, %v449_v38  ;;  %v1159_v49 = vshrl.u32 %v542_v52, 7  ;;  %v618_v42 = vadd.s32 4294967208, %v1157_v53 }
 0x225   :  { %498 = vadd.xlane.f32.xlu1 %v471_v43  ;;  %v452_v47 = vmax.f32 %v434_v41, 0.0 }
 0x226   :  { %v451_v46 = vmax.f32 %v429_v44, 0.0  ;;  %500 = vadd.xlane.f32.xlu0 %v472_v45  ;;  %v551_v0 = vsub.s32 %v548_v56, %v1159_v49  ;;  %v558_v3 = vsub.s32 %v555_v58, %v1159_v49  ;;  %v565_v5 = vsub.s32 %v562_v59, %v1159_v49 }
 0x227   :  { %v475_v51 = vmul.f32 %v1125_v54, %v452_v47  ;;  %v572_v9 = vsub.s32 %v569_v62, %v1159_v49  ;;  %v579_v14 = vsub.s32 %v576_v2, %v1159_v49  ;;  %v586_v16 = vsub.s32 %v583_v4, %v1159_v49 }
 0x228   :  { %v474_v50 = vmul.f32 %v1125_v54, %v451_v46  ;;  %v546_v54 = vsub.s32 %v1157_v53, %v1159_v49  ;;  %v593_v30 = vsub.s32 %v590_v17, %v1159_v49  ;;  %v600_v34 = vsub.s32 %v597_v22, %v1159_v49 }
 0x229   :  { %502 = vadd.xlane.f32.xlu1 %v473_v48  ;;  %v607_v41 = vsub.s32 %v604_v31, %v1159_v49  ;;  %v614_v46 = vsub.s32 %v611_v35, %v1159_v49  ;;  %v625_v47 = vadd.s32 4294967200, %v1157_v53  ;;  %v621_v56 = vsub.s32 %v618_v42, %v1159_v49 }
 0x22a   :  { %504 = vadd.xlane.f32.xlu0 %v474_v50  ;;  %v632_v58 = vadd.s32 4294967192, %v1157_v53  ;;  %v639_v62 = vadd.s32 4294967184, %v1157_v53 }
 0x22c   :  { %v635_v4 = vsub.s32 %v632_v58, %v1159_v49 }
 0x22d   :  { %506 = vadd.xlane.f32.xlu1 %v475_v51 }
 0x29a   :  { %v479_v55 = vpop.xlane.xlu0 %478 }
 0x29b   :  { %v511_v1 = vadd.f32 %v1165_v57, %v479_v55 }
 0x29d   :  { %v552_v12 = vrot.slane %v511_v1, %v551_v0 }
 0x29e   :  { %v483_v60 = vpop.xlane.xlu1 %482  ;;  %v477_v61 = vpop.xlane.xlu0 %476 }
 0x29f   :  { %v510_v63 = vadd.f32 %v1165_v57, %v477_v61  ;;  %v513_v6 = vadd.f32 %v1165_v57, %v483_v60  ;;  %v628_v61 = vsub.s32 %v625_v47, %v1159_v49 }
 0x2a1   :  { %v547_v7 = vrot.slane %v510_v63, %v546_v54  ;;  %v566_v18 = vrot.slane %v513_v6, %v565_v5  ;;  %v646_v5 = vadd.s32 4294967176, %v1157_v53 }
 0x2a2   :  { %v481_v8 = vpop.xlane.xlu1 %480 }
 0x2a3   :  { %v512_v10 = vadd.f32 %v1165_v57, %v481_v8  ;;  %v485_v11 = vpop.xlane.xlu0 %484  ;;  %v554_v19 = vsel %vm553_vm0, %v552_v12, %v547_v7 }
 0x2a4   :  { %v514_v13 = vadd.f32 %v1165_v57, %v485_v11 }
 0x2a5   :  { %v559_v15 = vrot.slane %v512_v10, %v558_v3 }
 0x2a6   :  { %v573_v20 = vrot.slane %v514_v13, %v572_v9  ;;  %v487_v21 = vpop.xlane.xlu1 %486  ;;  %v642_v9 = vsub.s32 %v639_v62, %v1159_v49 }
 0x2a7   :  { %v561_v23 = vsel %vm560_vm1, %v559_v15, %v554_v19  ;;  %v515_v24 = vadd.f32 %v1165_v57, %v487_v21  ;;  %v489_v25 = vpop.xlane.xlu0 %488  ;;  %v649_v15 = vsub.s32 %v646_v5, %v1159_v49 }
 0x2a8   :  { %v568_v26 = vsel %vm567_vm2, %v566_v18, %v561_v23  ;;  %v516_v27 = vadd.f32 %v1165_v57, %v489_v25 }
 0x2a9   :  { %v575_v28 = vsel %vm574_vm3, %v573_v20, %v568_v26  ;;  %v580_v29 = vrot.slane %v515_v24, %v579_v14 }
 0x2aa   :  { %v587_v32 = vrot.slane %v516_v27, %v586_v16  ;;  %v491_v33 = vpop.xlane.xlu1 %490 }
 0x2ab   :  { %v582_v36 = vsel %vm581_vm4, %v580_v29, %v575_v28  ;;  %v517_v37 = vadd.f32 %v1165_v57, %v491_v33  ;;  %v493_v38 = vpop.xlane.xlu0 %492 }
 0x2ac   :  { %v518_v39 = vadd.f32 %v1165_v57, %v493_v38  ;;  %v589_v43 = vsel %vm588_vm5, %v587_v32, %v582_v36 }
 0x2ad   :  { %v594_v40 = vrot.slane %v517_v37, %v593_v30 }
 0x2ae   :  { %v601_v44 = vrot.slane %v518_v39, %v600_v34  ;;  %v495_v45 = vpop.xlane.xlu1 %494 }
 0x2af   :  { %v596_v48 = vsel %vm595_vm6, %v594_v40, %v589_v43  ;;  %v519_v50 = vadd.f32 %v1165_v57, %v495_v45  ;;  %v497_v51 = vpop.xlane.xlu0 %496 }
 0x2b0   :  { %v520_v52 = vadd.f32 %v1165_v57, %v497_v51  ;;  %v603_v59 = vsel %vm602_vm7, %v601_v44, %v596_v48 }
 0x2b1   :  { %v608_v55 = vrot.slane %v519_v50, %v607_v41 }
 0x2b2   :  { %v615_v60 = vrot.slane %v520_v52, %v614_v46  ;;  %v499_v54 = vpop.xlane.xlu1 %498 }
 0x2b3   :  { %v610_v63 = vsel %vm609_vm8, %v608_v55, %v603_v59  ;;  %v521_v0 = vadd.f32 %v1165_v57, %v499_v54  ;;  %v501_v1 = vpop.xlane.xlu0 %500 }
 0x2b4   :  { %v522_v2 = vadd.f32 %v1165_v57, %v501_v1  ;;  %v617_v6 = vsel %vm616_vm9, %v615_v60, %v610_v63 }
 0x2b5   :  { %v622_v3 = vrot.slane %v521_v0, %v621_v56 }
 0x2b6   :  { %v629_v7 = vrot.slane %v522_v2, %v628_v61  ;;  %v503_v8 = vpop.xlane.xlu1 %502 }
 0x2b7   :  { %v624_v10 = vsel %vm623_vm10, %v622_v3, %v617_v6  ;;  %v523_v11 = vadd.f32 %v1165_v57, %v503_v8  ;;  %v505_v12 = vpop.xlane.xlu0 %504 }
 0x2b8   :  { %v524_v13 = vadd.f32 %v1165_v57, %v505_v12  ;;  %v631_v16 = vsel %vm630_vm11, %v629_v7, %v624_v10 }
 0x2b9   :  { %v636_v14 = vrot.slane %v523_v11, %v635_v4 }
 0x2ba   :  { %v643_v17 = vrot.slane %v524_v13, %v642_v9  ;;  %v507_v18 = vpop.xlane.xlu1 %506 }
 0x2bb   :  { %v638_v53 = vsel %vm637_vm12, %v636_v14, %v631_v16  ;;  %v525_v19 = vadd.f32 %v1165_v57, %v507_v18 }
 0x2bc   :  { %v645_v21 = vsel %vm644_vm13, %v643_v17, %v638_v53 }
 0x2bd   :  { %v650_v20 = vrot.slane %v525_v19, %v649_v15 }
 0x2bf   :  { %v652_v22 = vsel %vm651_vm14, %v650_v20, %v645_v21 }
 0x2c0   :  { %654 = vst [vmem:[#allocation9] sm:$0x1] %v652_v22 }
 0x2c1   :  { %997 = shalt.err (!%p994_p0)
}
 0x2c2   :  { %s998_s23 = scalar_lea.hbm %s1234_s7, 16 }
 0x2c3   :  { %p999_p1 = scmp.ne.s32.totalorder %s1234_s7, %s998_s23  ;;  %p1002_p2 = scmp.lt.u32.totalorder %s998_s23, %s1234_s7 }
 0x2c5   :  { %p1004_p3 = pnand %p1002_p2, %p999_p1 }
 0x2c7   :  { %1007 = shalt.err (!%p1004_p3)
}
 0x2c8   :  { %664 = dma.vmem_to_hbm [thread:$0]  %s662_s18, 16, %s1234_s7, [#allocation5]  }
 0x2c9   :  { %1012 = dma.done.wait [#allocation5], 16  }
 0x2ca   :  { %1013 = vsyncadd [#allocation5], 4294967280 }
 0x2cb   :  { %668 = vsyncpa [#allocation4], 1 }
 0x2cc   :  { %669 = vsyncpa [#allocation7], 1 }
 0x2cd   :  { %670 = vsyncpa [#allocation5], 1 }

</bundles_post_ra>
